<compile_context>
chip_gen: v7x
topology: tpu7x:2x2x1
jax: 0.10.0
libtpu: 0.0.40
codegen_flags: <defaults>
</compile_context>

<pallas_src>
import functools

import jax
import jax.numpy as jnp
from jax.experimental import pallas as pl
from jax.experimental.pallas import tpu as pltpu

_SUBLANE = 8


def _round_up(n, m):
    return ((n + m - 1) // m) * m


def _res_net_kernel(x_ref, w1_ref, b1_ref, w2_ref, b2_ref, o_ref):
    # x:  [TB, D_in]   w1: [D_in, H]   b1: [1, H]
    # w2: [H, D_out]   b2: [1, D_out]  o:  [TB, D_out]
    # All compute in f32 (accumulate, bias, tanh, residual); I/O dtype may be bf16.
    x = x_ref[...].astype(jnp.float32)                 # also the residual
    # layer1: ResBlock = tanh(Linear(x))
    h = jnp.tanh(
        jnp.dot(x, w1_ref[...], preferred_element_type=jnp.float32) + b1_ref[...]
    )
    # layer2: Linear + residual skip from the module input
    y = jnp.dot(h, w2_ref[...], preferred_element_type=jnp.float32) + b2_ref[...] + x
    o_ref[...] = y.astype(o_ref.dtype)


@functools.partial(jax.jit, static_argnames=("block_b", "io_dtype"))
def res_net_forward(x, w1, b1, w2, b2, *, block_b=8192, io_dtype=None):
    """Fused Res_Net forward pass in a single Pallas TPU kernel.

    x : [B, D_in]
    w1: [D_in, H], b1: [H], w2: [H, D_out], b2: [D_out]; D_out == D_in (residual add).

    block_b : batch tile size for the tiled (large-B) path; weights stay VMEM-resident.
    io_dtype: optional dtype (e.g. jnp.bfloat16) for streaming x / out through HBM.
              Compute (accumulate / bias / tanh / residual) always stays float32.
    """
    B, D_in = x.shape
    H = w1.shape[1]
    D_out = w2.shape[1]
    assert D_out == D_in, "residual add requires out_unit == input_unit"

    if io_dtype is not None:
        x = x.astype(io_dtype)
    out_dtype = x.dtype

    # Tiny, VMEM-resident parameters — keep them f32, reshape biases to 2-D rows.
    w1_f = w1.astype(jnp.float32)
    w2_f = w2.astype(jnp.float32)
    b1_2d = b1.reshape(1, H).astype(jnp.float32)
    b2_2d = b2.reshape(1, D_out).astype(jnp.float32)

    if B <= block_b:
        # ---- small batch: grid-less call, whole arrays resident in VMEM (true shapes,
        #      no padding / slicing — block dims equal full array dims).
        out = pl.pallas_call(
            _res_net_kernel,
            out_shape=jax.ShapeDtypeStruct((B, D_out), out_dtype),
            in_specs=[pl.BlockSpec(memory_space=pltpu.MemorySpace.VMEM)] * 5,
            out_specs=pl.BlockSpec(memory_space=pltpu.MemorySpace.VMEM),
        )(x, w1_f, b1_2d, w2_f, b2_2d)
    else:
        # ---- large batch: tile over B only (cdiv grid, partial boundary block masked
        #      by Pallas); weights/biases VMEM-resident via constant index_map.
        TB = _round_up(min(block_b, B), _SUBLANE)
        out = pl.pallas_call(
            _res_net_kernel,
            out_shape=jax.ShapeDtypeStruct((B, D_out), out_dtype),
            grid=(pl.cdiv(B, TB),),
            in_specs=[
                pl.BlockSpec((TB, D_in), lambda i: (i, 0)),
                pl.BlockSpec((D_in, H), lambda i: (0, 0)),
                pl.BlockSpec((1, H), lambda i: (0, 0)),
                pl.BlockSpec((H, D_out), lambda i: (0, 0)),
                pl.BlockSpec((1, D_out), lambda i: (0, 0)),
            ],
            out_specs=pl.BlockSpec((TB, D_out), lambda i: (i, 0)),
            compiler_params=pltpu.CompilerParams(
                dimension_semantics=("parallel",),
            ),
        )(x, w1_f, b1_2d, w2_f, b2_2d)

    return out


def _reference(x, w1, b1, w2, b2):
    h = jnp.tanh(x @ w1 + b1)
    return h @ w2 + b2 + x


if __name__ == "__main__":
    # Shapes consistent with the module: input_unit == out_unit (residual add).
    batch, input_unit, hidden_unit, out_unit = 8, 32, 64, 32

    key = jax.random.PRNGKey(0)
    kx, k1, k2, k3, k4 = jax.random.split(key, 5)

    x = jax.random.normal(kx, (batch, input_unit), dtype=jnp.float32)

    # Deterministic param init (PyTorch-Linear-style uniform fan-in bound).
    bound1 = 1.0 / (input_unit ** 0.5)
    bound2 = 1.0 / (hidden_unit ** 0.5)
    w1 = jax.random.uniform(k1, (input_unit, hidden_unit), jnp.float32, -bound1, bound1)
    b1 = jax.random.uniform(k2, (hidden_unit,), jnp.float32, -bound1, bound1)
    w2 = jax.random.uniform(k3, (hidden_unit, out_unit), jnp.float32, -bound2, bound2)
    b2 = jax.random.uniform(k4, (out_unit,), jnp.float32, -bound2, bound2)

    ref = _reference(x, w1, b1, w2, b2)

    # 1) Small-batch path (grid-less, true shapes, no padding) — f32, exact.
    out = jax.block_until_ready(res_net_forward(x, w1, b1, w2, b2))
    assert out.shape == (batch, out_unit)
    assert jnp.allclose(out, ref, atol=1e-5, rtol=1e-5), "mismatch vs reference (small path)"

    # 2) Large-batch tiled path: cdiv grid with a partial boundary block
    #    (B=5000, TB=2048 -> grid=3, last block covers 904 valid rows).
    big_batch = 5000
    xb = jax.random.normal(jax.random.PRNGKey(1), (big_batch, input_unit), dtype=jnp.float32)
    out_big = jax.block_until_ready(res_net_forward(xb, w1, b1, w2, b2, block_b=2048))
    ref_big = _reference(xb, w1, b1, w2, b2)
    assert out_big.shape == (big_batch, out_unit)
    assert jnp.allclose(out_big, ref_big, atol=1e-5, rtol=1e-5), "mismatch vs reference (tiled path)"

    # 3) bf16 I/O option (halves HBM traffic; compute stays f32 in-kernel).
    out_bf16 = jax.block_until_ready(
        res_net_forward(x, w1, b1, w2, b2, io_dtype=jnp.bfloat16)
    )
    assert out_bf16.dtype == jnp.bfloat16
    assert jnp.allclose(out_bf16.astype(jnp.float32), ref, atol=1e-1, rtol=1e-1), \
        "mismatch vs reference (bf16 I/O path)"

    print("KERNEL_OK")
</pallas_src>

<mosaic_0001>
module attributes {stable_mosaic.version = 11 : i64} {
  func.func @_res_net_kernel(%arg0: memref<8x32xf32, #tpu.memory_space<vmem>>, %arg1: memref<32x64xf32, #tpu.memory_space<vmem>>, %arg2: memref<1x64xf32, #tpu.memory_space<vmem>>, %arg3: memref<64x32xf32, #tpu.memory_space<vmem>>, %arg4: memref<1x32xf32, #tpu.memory_space<vmem>>, %arg5: memref<8x32xf32, #tpu.memory_space<vmem>>) attributes {dimension_semantics = [], scalar_prefetch = 0 : i64, scratch_operands = 0 : i64, tpu.core_type = #tpu.core_type<tc>} {
    %c0 = arith.constant 0 : index
    %c0_0 = arith.constant 0 : index
    %0 = vector.load %arg0[%c0, %c0_0] : memref<8x32xf32, #tpu.memory_space<vmem>>, vector<8x32xf32>
    %c0_1 = arith.constant 0 : index
    %c0_2 = arith.constant 0 : index
    %1 = vector.load %arg1[%c0_1, %c0_2] : memref<32x64xf32, #tpu.memory_space<vmem>>, vector<32x64xf32>
    %cst = arith.constant dense<0.000000e+00> : vector<8x64xf32>
    %2 = tpu.matmul %0, %1, %cst {dimension_numbers = #tpu.dot_dimension_numbers<[1], [0], [0], [1], [0, 0, 1, 1], [], []>} : vector<8x32xf32>, vector<32x64xf32>, vector<8x64xf32> -> vector<8x64xf32>
    %c0_3 = arith.constant 0 : index
    %c0_4 = arith.constant 0 : index
    %3 = vector.load %arg2[%c0_3, %c0_4] : memref<1x64xf32, #tpu.memory_space<vmem>>, vector<1x64xf32>
    %4 = vector.broadcast %3 : vector<1x64xf32> to vector<8x64xf32>
    %5 = arith.addf %2, %4 : vector<8x64xf32>
    %6 = math.tanh %5 : vector<8x64xf32>
    %c0_5 = arith.constant 0 : index
    %c0_6 = arith.constant 0 : index
    %7 = vector.load %arg3[%c0_5, %c0_6] : memref<64x32xf32, #tpu.memory_space<vmem>>, vector<64x32xf32>
    %cst_7 = arith.constant dense<0.000000e+00> : vector<8x32xf32>
    %8 = tpu.matmul %6, %7, %cst_7 {dimension_numbers = #tpu.dot_dimension_numbers<[1], [0], [0], [1], [0, 0, 1, 1], [], []>} : vector<8x64xf32>, vector<64x32xf32>, vector<8x32xf32> -> vector<8x32xf32>
    %c0_8 = arith.constant 0 : index
    %c0_9 = arith.constant 0 : index
    %9 = vector.load %arg4[%c0_8, %c0_9] : memref<1x32xf32, #tpu.memory_space<vmem>>, vector<1x32xf32>
    %10 = vector.broadcast %9 : vector<1x32xf32> to vector<8x32xf32>
    %11 = arith.addf %8, %10 : vector<8x32xf32>
    %12 = arith.addf %11, %0 : vector<8x32xf32>
    %c0_10 = arith.constant 0 : index
    %c0_11 = arith.constant 0 : index
    %13 = vector.load %arg5[%c0_10, %c0_11] : memref<8x32xf32, #tpu.memory_space<vmem>>, vector<8x32xf32>
    tpu.vector_store %arg5[%c0_10, %c0_11], %12 {strides = array<i32>} : memref<8x32xf32, #tpu.memory_space<vmem>>, vector<8x32xf32>,
    return
  }
}

</mosaic_0001>

<bundles_post_ra>
// kernel: res_net_forward.1
= control target key start
LH: loop header
LB: loop body
LE: loop exit
PB: predicated region body
PF: predicated region fallthrough
CT: control target
= control target key end

     0   :  { %v309_v3 = vmov 0.0|0.0   ;;  %vm310_vm0 = vmmov 0   ;;  %v311_v6 = vmov 0.0   ;;  %s402_s0 = inlined_call_operand.vmem [shape: f32[8,32], index: 0, kind: input, shape index: {}]   ;;  %s403_s1 = inlined_call_operand.vmem [shape: f32[32,64], index: 1, kind: input, shape index: {}]   ;;  %s404_s2 = inlined_call_operand.vmem [shape: f32[1,64], index: 2, kind: input, shape index: {}]   ;;  %s405_s3 = inlined_call_operand.vmem [shape: f32[64,32], index: 3, kind: input, shape index: {}]   ;;  %s406_s4 = inlined_call_operand.vmem [shape: f32[1,32], index: 4, kind: input, shape index: {}]   ;;  %s407_s5 = inlined_call_operand.hbm [shape: f32[8,32], index: 5, kind: output, shape index: {}]  }
   0x1   :  { %v22_v0 = vld [vmem:[%s403_s1] sm:$0xff]  ;;  %v23_v1 = vld [vmem:[%s403_s1 + $0x8] sm:$0xff]  ;;  %v24_v2 = vld [vmem:[%s403_s1 + $0x10] sm:$0xff]  ;;  %261 = vmatprep.subr.bf16.mxu0 %v309_v3  ;;  %239 = vmatprep.mubr.msk.f32.mxu0 %vm310_vm0, %v311_v6 }
   0x2   :  { %v262_v4 = vpack.c.bf16 %v23_v1, %v22_v0  ;;  %v25_v5 = vld [vmem:[%s403_s1 + $0x18] sm:$0xff]  ;;  %v108_v7 = vld [vmem:[%s405_s3] sm:$0xff]  ;;  %267 = vmatprep.subr.bf16.mxu1 %v309_v3  ;;  %v109_v8 = vld [vmem:[%s405_s3 + $0x8] sm:$0xff]  ;;  %258 = vmatprep.mubr.msk.f32.mxu1 %vm310_vm0, %v311_v6 }
   0x3   :  { %10 = vsyncpa [#allocation3], 0  ;;  %v265_v9 = vpack.c.bf16 %v25_v5, %v24_v2  ;;  %v268_v10 = vpack.c.bf16 %v109_v8, %v108_v7  ;;  %v21_v11 = vld [vmem:[%s402_s0] sm:$0xff]  ;;  %vm33_vm1 = vcmask 261120   ;;  %v110_v12 = vld [vmem:[%s405_s3 + $0x10] sm:$0xff]  ;;  %vm123_vm2 = vcmask 523264  }
   0x4   :  { %263 = vmatpush3.bf16.msra.mxu0 %v262_v4  ;;  %v111_v13 = vld [vmem:[%s405_s3 + $0x18] sm:$0xff]  ;;  %v112_v15 = vld [vmem:[%s405_s3 + $0x20] sm:$0xff]  ;;  %v113_v16 = vld [vmem:[%s405_s3 + $0x28] sm:$0xff] }
   0x5   :  { %264 = vmatprep.subr.bf16.mxu0 %v309_v3  ;;  %269 = vmatpush3.bf16.msra.mxu1 %v268_v10  ;;  %v271_v14 = vpack.c.bf16 %v111_v13, %v110_v12  ;;  %v274_v17 = vpack.c.bf16 %v113_v16, %v112_v15  ;;  %v114_v18 = vld [vmem:[%s405_s3 + $0x30] sm:$0xff]  ;;  %v115_v19 = vld [vmem:[%s405_s3 + $0x38] sm:$0xff]  ;;  %v213_v21 = vld [vmem:[%s404_s2] ss:$0 sm:$0xff]  ;;  %s312_s3 = smov [#allocation2]  }
   0x6   :  { %270 = vmatprep.subr.bf16.mxu1 %v309_v3  ;;  %v277_v20 = vpack.c.bf16 %v115_v19, %v114_v18  ;;  %v215_v26 = vld [vmem:[%s406_s4] ss:$0 sm:$0xff]  ;;  %s205_s21 = sshll.u32 %s312_s3, 4  ;;  %s206_s21 = int_to_ptr.vmem [resolvable:$true] %s205_s21 }
   0x7   :  { %s285_s2 = scalar_lea.vmem %s206_s21, 128  ;;  %p290_p1 = scmp.lt.s32.totalorder %s206_s21, %s206_s21 }
   0x8   :  { %266 = vmatpush3.bf16.msra.mxu0 %v265_v9  ;;  %p286_p0 = scmp.ne.s32.totalorder %s206_s21, %s285_s2  ;;  %p291_p2 = scmp.lt.s32.totalorder %s285_s2, %s285_s2 }
   0x9   :  { %272 = vmatpush3.bf16.msra.mxu1 %v271_v14 }
   0xa   :  { %273 = vmatprep.subr.bf16.mxu1 %v309_v3  ;;  %p292_p3 = por %p291_p2, %p290_p1 }
   0xb   :  { %240 = vmatmul.mubr.msk.f32.vlgmr.msra.gmra.mrb[0].mxu0 %vm33_vm1, %v21_v11 }
   0xc   :  { %p293_p4 = pnand %p292_p3, %p286_p0 }
   0xd   :  { %275 = vmatpush3.bf16.msra.mxu1 %v274_v17 }
   0xe   :  { %276 = vmatprep.subr.bf16.mxu1 %v309_v3 }
  0x11   :  { %278 = vmatpush3.bf16.msra.mxu1 %v277_v20 }
  0xde   :  { %v103_v22 = vpop.f32.mrb[0].mxu0 }
  0xdf   :  { %v104_v23 = vadd.f32 %v213_v21, %v103_v22  ;;  %v241_v24 = vpop.f32.mrb[1].mxu0 }
  0xe1   :  { %283 = vtanh.f32 %v104_v23 }
  0xeb   :  { %v284_v25 = vpop.eup %283 }
  0xec   :  { %259 = vmatmul.mubr.msk.f32.vlgmr.msra.gmra.mrb[0].mxu1 %vm123_vm2, %v284_v25 }
 0x1bf   :  { %v193_v27 = vpop.f32.mrb[0].mxu1 }
 0x1c0   :  { %v194_v28 = vadd.f32 %v215_v26, %v193_v27  ;;  %v260_v29 = vpop.f32.mrb[1].mxu1 }
 0x1c2   :  { %v197_v30 = vadd.f32 %v194_v28, %v21_v11 }
 0x1c4   :  { %198 = vst.msk [vmem:[#allocation2] sm:$0xff] %vm33_vm1, %v197_v30 }
 0x1c5   :  { %296 = shalt.err (!%p293_p4)
}
 0x1c6   :  { %s297_s4 = scalar_lea.hbm %s407_s5, 128 }
 0x1c7   :  { %p298_p5 = scmp.ne.s32.totalorder %s407_s5, %s297_s4  ;;  %p301_p6 = scmp.lt.u32.totalorder %s297_s4, %s407_s5 }
 0x1c9   :  { %p303_p7 = pnand %p301_p6, %p298_p5 }
 0x1cb   :  { %306 = shalt.err (!%p303_p7)
}
 0x1cc   :  { %208 = dma.vmem_to_hbm [thread:$0]  %s206_s21, 128, %s407_s5, [#allocation3]  }
 0x1cd   :  { %307 = dma.done.wait [#allocation3], 128  }
 0x1ce   :  { %308 = vsyncadd [#allocation3], 4294967168 }
 0x1cf   :  { %212 = vsyncpa [#allocation3], 1 }

</bundles_post_ra>
